<compile_context>
chip_gen: v5e
topology: v5e:2x2
jax: 0.10.0
libtpu: 0.0.40
codegen_flags: <defaults>
</compile_context>

<pallas_src>
import functools
import math

import jax
import jax.numpy as jnp
from jax.experimental import pallas as pl
from jax.experimental.pallas import tpu as pltpu


# ----------------------------------------------------------------------------
# Kernels
# ----------------------------------------------------------------------------
def _single_kv_kernel(q_ref, k_ref, v_ref, mask_ref, o_ref):
    """Whole KV sequence in one tile: plain softmax, no online rescale."""
    scale = 1.0 / math.sqrt(q_ref.shape[-1])
    q = q_ref[...] * scale                              # [TQ, D]
    k = k_ref[...]                                      # [S,  D]
    v = v_ref[...]                                      # [S,  D]

    s = jax.lax.dot_general(                            # [TQ, S], f32 acc on MXU
        q, k, (((1,), (1,)), ((), ())),
        preferred_element_type=jnp.float32)
    s = s + mask_ref[...].astype(jnp.float32)

    m = jnp.max(s, axis=-1, keepdims=True)
    m = jnp.where(m == -jnp.inf, 0.0, m)                # fully-masked row guard
    p = jnp.exp(s - m)
    l = jnp.sum(p, axis=-1, keepdims=True)

    inv = pl.reciprocal(l, approx=True)                 # EUP slot
    inv = inv * (2.0 - l * inv)                         # 1 Newton step -> ~f32
    out = jnp.dot(p.astype(v.dtype), v,
                  preferred_element_type=jnp.float32) * inv
    out = jnp.where(l == 0.0, 0.0, out)
    o_ref[...] = out.astype(o_ref.dtype)


def _online_softmax_kernel(q_ref, k_ref, v_ref, mask_ref, o_ref, *scratch,
                           acc_in_out):
    """Tiled KV axis with online softmax (running max/sum in VMEM scratch)."""
    if acc_in_out:
        m_sc, l_sc, qs_sc = scratch
        acc_ref = o_ref           # f32 output block is VMEM-resident across ki
    else:
        m_sc, l_sc, qs_sc, acc_ref = scratch

    ki = pl.program_id(2)

    @pl.when(ki == 0)
    def _init():
        m_sc[...] = jnp.full_like(m_sc, -jnp.inf)
        l_sc[...] = jnp.zeros_like(l_sc)
        acc_ref[...] = jnp.zeros_like(acc_ref)
        # Hoist the 1/sqrt(D) multiply out of the kv loop (Q resident over ki).
        scale = 1.0 / math.sqrt(q_ref.shape[-1])
        qs_sc[...] = q_ref[...] * scale

    q = qs_sc[...]                                      # [TQ, D] pre-scaled
    k = k_ref[...]                                      # [TK, D]
    v = v_ref[...]                                      # [TK, D]
    mask = mask_ref[...].astype(jnp.float32)            # [TQ, TK]

    s = jax.lax.dot_general(                            # [TQ, TK], f32 acc
        q, k, (((1,), (1,)), ((), ())),
        preferred_element_type=jnp.float32)
    s = s + mask

    m_prev = m_sc[...]                                  # [TQ, 1]
    m_new = jnp.maximum(m_prev, jnp.max(s, axis=-1, keepdims=True))
    m_safe = jnp.where(m_new == -jnp.inf, 0.0, m_new)   # fully-masked guard
    alpha = jnp.exp(m_prev - m_safe)
    p = jnp.exp(s - m_safe)                             # [TQ, TK]
    l_sc[...] = alpha * l_sc[...] + jnp.sum(p, axis=-1, keepdims=True)
    acc_ref[...] = alpha * acc_ref[...] + jnp.dot(
        p.astype(v.dtype), v, preferred_element_type=jnp.float32)
    m_sc[...] = m_new

    @pl.when(ki == pl.num_programs(2) - 1)
    def _finalize():
        l = l_sc[...]
        inv = pl.reciprocal(l, approx=True)
        inv = inv * (2.0 - l * inv)
        out = acc_ref[...] * inv
        out = jnp.where(l == 0.0, 0.0, out)
        o_ref[...] = out.astype(o_ref.dtype)


# ----------------------------------------------------------------------------
# Wrapper
# ----------------------------------------------------------------------------
def _pick_tile(size, cap, granule):
    """Largest divisor of `size` that is <= cap and a multiple of `granule`;
    falls back to `size` (full-extent blocks are always layout-legal)."""
    if size <= cap:
        return size
    t = (cap // granule) * granule
    while t >= granule:
        if size % t == 0:
            return t
        t -= granule
    return size


def attention(query, key, value, attn_mask, *, tq=None, tk=None):
    B, S, D = query.shape
    assert key.shape == (B, S, D) and value.shape == (B, S, D)
    assert attn_mask.shape == (S, S)

    # tq: sublane dim of Q/O blocks and the mask -> multiple of 8 or full S.
    # tk: lane dim of the mask tile            -> multiple of 128 or full S.
    if tq is None:
        tq = _pick_tile(S, 256, 8)
        # Keep >= 2 "parallel" grid elements so both v7x TensorCores get work.
        if B == 1 and tq == S and S >= 16:
            half = _pick_tile(S, S // 2, 8)
            if half != S:
                tq = half
    if tk is None:
        tk = _pick_tile(S, 512, 128)
    assert S % tq == 0 and S % tk == 0

    out_shape = jax.ShapeDtypeStruct((B, S, D), query.dtype)

    # ------------------------------------------------------------------ fast
    # Single kv tile: no reduction axis, no online-softmax bookkeeping.
    if tk == S:
        return pl.pallas_call(
            _single_kv_kernel,
            out_shape=out_shape,
            grid_spec=pltpu.PrefetchScalarGridSpec(
                num_scalar_prefetch=0,
                grid=(B, S // tq),
                in_specs=[
                    pl.BlockSpec((None, tq, D), lambda b, qi: (b, qi, 0)),  # Q
                    pl.BlockSpec((None, S, D), lambda b, qi: (b, 0, 0)),    # K
                    pl.BlockSpec((None, S, D), lambda b, qi: (b, 0, 0)),    # V
                    pl.BlockSpec((tq, S), lambda b, qi: (qi, 0)),           # mask
                ],
                out_specs=pl.BlockSpec((None, tq, D), lambda b, qi: (b, qi, 0)),
            ),
            compiler_params=pltpu.CompilerParams(
                dimension_semantics=("parallel", "parallel")),
        )(query, key, value, attn_mask)

    # ------------------------------------------------------------ general
    acc_in_out = query.dtype == jnp.float32   # accumulate straight into o_ref
    kernel = functools.partial(_online_softmax_kernel, acc_in_out=acc_in_out)

    scratch = [
        pltpu.VMEM((tq, 1), jnp.float32),     # running max
        pltpu.VMEM((tq, 1), jnp.float32),     # running sum
        pltpu.VMEM((tq, D), query.dtype),     # pre-scaled Q
    ]
    if not acc_in_out:
        scratch.append(pltpu.VMEM((tq, D), jnp.float32))  # f32 accumulator

    return pl.pallas_call(
        kernel,
        out_shape=out_shape,
        grid_spec=pltpu.PrefetchScalarGridSpec(
            num_scalar_prefetch=0,
            grid=(B, S // tq, S // tk),       # kv reduction axis last
            in_specs=[
                pl.BlockSpec((None, tq, D), lambda b, qi, ki: (b, qi, 0)),  # Q
                pl.BlockSpec((None, tk, D), lambda b, qi, ki: (b, ki, 0)),  # K
                pl.BlockSpec((None, tk, D), lambda b, qi, ki: (b, ki, 0)),  # V
                pl.BlockSpec((tq, tk), lambda b, qi, ki: (qi, ki)),         # mask
            ],
            out_specs=pl.BlockSpec((None, tq, D), lambda b, qi, ki: (b, qi, 0)),
            scratch_shapes=scratch,
        ),
        compiler_params=pltpu.CompilerParams(
            dimension_semantics=("parallel", "parallel", "arbitrary")),
    )(query, key, value, attn_mask)


# ----------------------------------------------------------------------------
# Reference + test
# ----------------------------------------------------------------------------
def _reference(query, key, value, attn_mask):
    d = query.shape[-1]
    qk = jnp.einsum("bqd,bkd->bqk", query, key) / math.sqrt(d)
    qk = qk + attn_mask[None, :, :]
    w = jax.nn.softmax(qk, axis=-1)
    return jnp.einsum("bqk,bkd->bqd", w, value)


if __name__ == "__main__":
    root = jax.random.PRNGKey(0)
    k_q, k_k, k_v, k_m = jax.random.split(root, 4)

    B, S, D = 1, 8, 64
    query = jax.random.normal(k_q, (B, S, D), dtype=jnp.float32)
    key = jax.random.normal(k_k, (B, S, D), dtype=jnp.float32)
    value = jax.random.normal(k_v, (B, S, D), dtype=jnp.float32)
    attn_mask = jax.random.normal(k_m, (S, S), dtype=jnp.float32)

    out = attention(query, key, value, attn_mask)
    jax.block_until_ready(out)

    ref = _reference(query, key, value, attn_mask)
    assert out.shape == (B, S, D)
    assert jnp.allclose(out, ref, atol=1e-4, rtol=1e-4), float(
        jnp.max(jnp.abs(out - ref)))

    # Exercise the tiled online-softmax path too (forced small tiles).
    S2 = 256
    q2 = jax.random.normal(k_q, (B, S2, D), dtype=jnp.float32)
    k2 = jax.random.normal(k_k, (B, S2, D), dtype=jnp.float32)
    v2 = jax.random.normal(k_v, (B, S2, D), dtype=jnp.float32)
    m2 = jax.random.normal(k_m, (S2, S2), dtype=jnp.float32)
    out2 = attention(q2, k2, v2, m2, tq=64, tk=128)
    jax.block_until_ready(out2)
    ref2 = _reference(q2, k2, v2, m2)
    assert jnp.allclose(out2, ref2, atol=1e-4, rtol=1e-4), float(
        jnp.max(jnp.abs(out2 - ref2)))

    print("KERNEL_OK")
</pallas_src>

<mosaic_0001>
module attributes {stable_mosaic.version = 11 : i64} {
  func.func @_single_kv_kernel(%arg0: i32, %arg1: i32, %arg2: memref<1x8x64xf32, #tpu.memory_space<vmem>>, %arg3: memref<1x8x64xf32, #tpu.memory_space<vmem>>, %arg4: memref<1x8x64xf32, #tpu.memory_space<vmem>>, %arg5: memref<8x8xf32, #tpu.memory_space<vmem>>, %arg6: memref<1x8x64xf32, #tpu.memory_space<vmem>>) attributes {dimension_semantics = [#tpu.dimension_semantics<parallel>, #tpu.dimension_semantics<parallel>], iteration_bounds = array<i64: 1, 1>, scalar_prefetch = 0 : i64, scratch_operands = 0 : i64, tpu.core_type = #tpu.core_type<tc>, window_params = [{transform_indices = @transform_0, window_bounds = array<i64: 1, 8, 64>}, {transform_indices = @transform_1, window_bounds = array<i64: 1, 8, 64>}, {transform_indices = @transform_2, window_bounds = array<i64: 1, 8, 64>}, {transform_indices = @transform_3, window_bounds = array<i64: 8, 8>}, {transform_indices = @transform_4, window_bounds = array<i64: 1, 8, 64>}]} {
    %c0 = arith.constant 0 : index
    %c0_0 = arith.constant 0 : index
    %c0_1 = arith.constant 0 : index
    %0 = vector.load %arg2[%c0, %c0_0, %c0_1] : memref<1x8x64xf32, #tpu.memory_space<vmem>>, vector<1x8x64xf32>
    %1 = vector.shape_cast %0 : vector<1x8x64xf32> to vector<8x64xf32>
    %cst = arith.constant 1.250000e-01 : f32
    %2 = vector.broadcast %cst : f32 to vector<8x64xf32>
    %3 = arith.mulf %1, %2 : vector<8x64xf32>
    %c0_2 = arith.constant 0 : index
    %c0_3 = arith.constant 0 : index
    %c0_4 = arith.constant 0 : index
    %4 = vector.load %arg3[%c0_2, %c0_3, %c0_4] : memref<1x8x64xf32, #tpu.memory_space<vmem>>, vector<1x8x64xf32>
    %5 = vector.shape_cast %4 : vector<1x8x64xf32> to vector<8x64xf32>
    %c0_5 = arith.constant 0 : index
    %c0_6 = arith.constant 0 : index
    %c0_7 = arith.constant 0 : index
    %6 = vector.load %arg4[%c0_5, %c0_6, %c0_7] : memref<1x8x64xf32, #tpu.memory_space<vmem>>, vector<1x8x64xf32>
    %7 = vector.shape_cast %6 : vector<1x8x64xf32> to vector<8x64xf32>
    %cst_8 = arith.constant dense<0.000000e+00> : vector<8x8xf32>
    %8 = tpu.matmul %3, %5, %cst_8 {dimension_numbers = #tpu.dot_dimension_numbers<[1], [1], [0], [0], [0, 0, 1, 0], [], []>} : vector<8x64xf32>, vector<8x64xf32>, vector<8x8xf32> -> vector<8x8xf32>
    %c0_9 = arith.constant 0 : index
    %c0_10 = arith.constant 0 : index
    %9 = vector.load %arg5[%c0_9, %c0_10] : memref<8x8xf32, #tpu.memory_space<vmem>>, vector<8x8xf32>
    %10 = arith.addf %8, %9 : vector<8x8xf32>
    %cst_11 = arith.constant dense<0xFF800000> : vector<8xf32>
    %11 = vector.multi_reduction <maximumf>, %10, %cst_11 [1] : vector<8x8xf32> to vector<8xf32>
    %12 = vector.shape_cast %11 : vector<8xf32> to vector<8x1xf32>
    %cst_12 = arith.constant 0xFF800000 : f32
    %13 = vector.broadcast %cst_12 : f32 to vector<8x1xf32>
    %14 = arith.cmpf oeq, %12, %13 : vector<8x1xf32>
    %cst_13 = arith.constant 0.000000e+00 : f32
    %15 = vector.broadcast %cst_13 : f32 to vector<8x1xf32>
    %16 = arith.select %14, %15, %12 : vector<8x1xi1>, vector<8x1xf32>
    %17 = vector.broadcast %16 : vector<8x1xf32> to vector<8x8xf32>
    %18 = arith.subf %10, %17 : vector<8x8xf32>
    %19 = math.exp %18 : vector<8x8xf32>
    %cst_14 = arith.constant dense<0.000000e+00> : vector<8xf32>
    %20 = vector.multi_reduction <add>, %19, %cst_14 [1] : vector<8x8xf32> to vector<8xf32>
    %21 = vector.shape_cast %20 : vector<8xf32> to vector<8x1xf32>
    %22 = tpu.reciprocal %21 {approx = true} : vector<8x1xf32> -> vector<8x1xf32>
    %23 = arith.mulf %21, %22 : vector<8x1xf32>
    %cst_15 = arith.constant 2.000000e+00 : f32
    %24 = vector.broadcast %cst_15 : f32 to vector<8x1xf32>
    %25 = arith.subf %24, %23 : vector<8x1xf32>
    %26 = arith.mulf %22, %25 : vector<8x1xf32>
    %cst_16 = arith.constant dense<0.000000e+00> : vector<8x64xf32>
    %27 = tpu.matmul %19, %7, %cst_16 {dimension_numbers = #tpu.dot_dimension_numbers<[1], [0], [0], [1], [0, 0, 1, 1], [], []>} : vector<8x8xf32>, vector<8x64xf32>, vector<8x64xf32> -> vector<8x64xf32>
    %28 = vector.broadcast %26 : vector<8x1xf32> to vector<8x64xf32>
    %29 = arith.mulf %27, %28 : vector<8x64xf32>
    %cst_17 = arith.constant 0.000000e+00 : f32
    %30 = vector.broadcast %cst_17 : f32 to vector<8x1xf32>
    %31 = arith.cmpf oeq, %21, %30 : vector<8x1xf32>
    %cst_18 = arith.constant 0.000000e+00 : f32
    %32 = vector.shape_cast %31 : vector<8x1xi1> to vector<8x1xi1>
    %33 = vector.broadcast %32 : vector<8x1xi1> to vector<8x64xi1>
    %34 = vector.broadcast %cst_18 : f32 to vector<8x64xf32>
    %35 = arith.select %33, %34, %29 : vector<8x64xi1>, vector<8x64xf32>
    %c0_19 = arith.constant 0 : index
    %c0_20 = arith.constant 0 : index
    %c0_21 = arith.constant 0 : index
    %36 = vector.load %arg6[%c0_19, %c0_20, %c0_21] : memref<1x8x64xf32, #tpu.memory_space<vmem>>, vector<1x8x64xf32>
    %37 = vector.shape_cast %36 : vector<1x8x64xf32> to vector<8x64xf32>
    %38 = vector.shape_cast %35 : vector<8x64xf32> to vector<1x8x64xf32>
    tpu.vector_store %arg6[%c0_19, %c0_20, %c0_21], %38 {strides = array<i32>} : memref<1x8x64xf32, #tpu.memory_space<vmem>>, vector<1x8x64xf32>,
    return
  }
  func.func @transform_0(%arg0: i32, %arg1: i32) -> (i32, i32, i32) {
    %c0_i32 = arith.constant 0 : i32
    %c0_i32_0 = arith.constant 0 : i32
    return %arg0, %arg1, %c0_i32 : i32, i32, i32
  }
  func.func @transform_1(%arg0: i32, %arg1: i32) -> (i32, i32, i32) {
    %c0_i32 = arith.constant 0 : i32
    %c0_i32_0 = arith.constant 0 : i32
    %c0_i32_1 = arith.constant 0 : i32
    return %arg0, %c0_i32, %c0_i32_0 : i32, i32, i32
  }
  func.func @transform_2(%arg0: i32, %arg1: i32) -> (i32, i32, i32) {
    %c0_i32 = arith.constant 0 : i32
    %c0_i32_0 = arith.constant 0 : i32
    %c0_i32_1 = arith.constant 0 : i32
    return %arg0, %c0_i32, %c0_i32_0 : i32, i32, i32
  }
  func.func @transform_3(%arg0: i32, %arg1: i32) -> (i32, i32) {
    %c0_i32 = arith.constant 0 : i32
    %c0_i32_0 = arith.constant 0 : i32
    return %arg1, %c0_i32 : i32, i32
  }
  func.func @transform_4(%arg0: i32, %arg1: i32) -> (i32, i32, i32) {
    %c0_i32 = arith.constant 0 : i32
    %c0_i32_0 = arith.constant 0 : i32
    return %arg0, %arg1, %c0_i32 : i32, i32, i32
  }
}

</mosaic_0001>

<bundles_post_ra>
// kernel: tpu_custom_call.1
= control target key start
LH: loop header
LB: loop body
LE: loop exit
PB: predicated region body
PF: predicated region fallthrough
CT: control target
= control target key end

     0   :  { %9 = vsyncpa [#allocation3], 0  ;;  %s357_s0 = inlined_call_operand.hbm [shape: f32[1,8,64], index: 0, kind: input, shape index: {}]   ;;  %s358_s1 = inlined_call_operand.hbm [shape: f32[1,8,64], index: 1, kind: input, shape index: {}]   ;;  %s359_s2 = inlined_call_operand.hbm [shape: f32[1,8,64], index: 2, kind: input, shape index: {}]   ;;  %s360_s3 = inlined_call_operand.hbm [shape: f32[8,8], index: 3, kind: input, shape index: {}]   ;;  %s361_s4 = inlined_call_operand.hbm [shape: f32[1,8,64], index: 4, kind: output, shape index: {}]  }
   0x1   :  { %10 = vsyncpa [#allocation6], 0 }
   0x2   :  { %11 = vsyncpa [#allocation9], 0  ;;  %s29_s17 = sshll.u32 %s358_s1, 4  ;;  %s30_s17 = int_to_ptr.hbm [resolvable:$true] %s29_s17 }
   0x3   :  { %12 = vsyncpa [#allocation4], 0  ;;  %s309_s18 = smov [#allocation5]   ;;  %s18_s22 = sshll.u32 %s357_s0, 4  ;;  %s19_s22 = int_to_ptr.hbm [resolvable:$true] %s18_s22 }
   0x4   :  { %s31_s19 = sshll.u32 %s309_s18, 4  ;;  %s310_s23 = smov [#allocation2]   ;;  %s32_s19 = int_to_ptr.vmem [resolvable:$true] %s31_s19 }
   0x5   :  { %34 = dma.hbm_to_vmem [thread:$0]  %s30_s17, 128, %s32_s19, [#allocation6]  }
   0x6   :  { %s20_s24 = sshll.u32 %s310_s23, 4  ;;  %s40_s27 = sshll.u32 %s359_s2, 4  ;;  %s21_s24 = int_to_ptr.vmem [resolvable:$true] %s20_s24  ;;  %s41_s27 = int_to_ptr.hbm [resolvable:$true] %s40_s27 }
   0x7   :  { %23 = dma.hbm_to_vmem [thread:$0]  %s19_s22, 128, %s21_s24, [#allocation3]  }
   0x8   :  { %s51_s29 = sshll.u32 %s360_s3, 4  ;;  %s311_s30 = smov [#allocation7]   ;;  %s52_s29 = int_to_ptr.hbm [resolvable:$true] %s51_s29 }
   0x9   :  { %s42_s5 = sshll.u32 %s311_s30, 4  ;;  %s312_s0 = smov [#allocation8]   ;;  %s43_s5 = int_to_ptr.vmem [resolvable:$true] %s42_s5 }
   0xa   :  { %45 = dma.hbm_to_vmem [thread:$0]  %s41_s27, 128, %s43_s5, [#allocation6]  }
   0xb   :  { %s53_s6 = sshll.u32 %s312_s0, 4  ;;  %s54_s6 = int_to_ptr.vmem [resolvable:$true] %s53_s6 }
   0xc   :  { %56 = dma.hbm_to_vmem [thread:$0]  %s52_s29, 128, %s54_s6, [#allocation9]  }
   0xd   :  { %301 = dma.done.wait [#allocation3], 128  }
   0xe   :  { %302 = vsyncadd [#allocation3], 4294967168 }
   0xf   :  { %303 = dma.done.wait [#allocation6], 256  }
  0x10   :  { %304 = vsyncadd [#allocation6], 4294967040 }
  0x11   :  { %305 = dma.done.wait [#allocation9], 128  }
  0x12   :  { %306 = vsyncadd [#allocation9], 4294967168  ;;  %vm78_vm0 = vcmask 523264   ;;  %v75_v0 = vld [vmem:[#allocation5] sm:$0xff]  ;;  %v73_v1 = vld [vmem:[#allocation2] sm:$0xff]  ;;  %vm105_vm1 = vcmask 64512  }
  0x13   :  { %169 = vmatpush.xpose.msk.msra.mxu0 %vm78_vm0, %v75_v0  ;;  %v74_v2 = vmul.f32 0.125, %v73_v1  ;;  %v77_v3 = vld [vmem:[#allocation8] sm:$0xff]  ;;  %v76_v7 = vld [vmem:[#allocation7] sm:$0xff]  ;;  %s313_s2 = smov [#allocation10]   ;;  %s157_s9 = sshll.u32 %s361_s4, 4  ;;  %s158_s9 = int_to_ptr.hbm [resolvable:$true] %s157_s9 }
  0x14   :  { %139 = vmatpush.msra.mxu1 %v76_v7  ;;  %s155_s3 = sshll.u32 %s313_s2, 4  ;;  %s156_s3 = int_to_ptr.vmem [resolvable:$true] %s155_s3 }
  0x16   :  { %170 = vmatmul.msk.f32.vlgmr.msra.gmra.mxu0 %vm78_vm0, %v74_v2 }
  0x93   :  { %v102_v4 = vpop.f32.mrf.mxu0 }
  0x94   :  { %v103_v5 = vadd.f32 %v102_v4, %v77_v3 }
  0x96   :  { %v106_v6 = vsel %vm105_vm1, %v103_v5, -inf }
  0x97   :  { %107 = vmax.xlane.f32.xlu0 %v106_v6 }
 0x10a   :  { %v108_v8 = vpop.xlane.xlu0 %107 }
 0x10b   :  { %vm109_vm2 = vcmp.eq.f32.partialorder %v108_v8, -inf }
 0x10c   :  { %v110_v9 = vsel %vm109_vm2, 0.0, %v108_v8 }
 0x10d   :  { %v111_v10 = vsub.f32 %v103_v5, %v110_v9 }
 0x10f   :  { %v112_v11 = vmul.f32 1.442695, %v111_v10 }
 0x111   :  { %177 = vpow2.f32 %v112_v11 }
 0x117   :  { %v178_v12 = vpop.eup %177 }
 0x118   :  { %171 = vmatmul.msk.f32.vlgmr.msra.gmra.mxu1 %vm105_vm1, %v178_v12  ;;  %v114_v13 = vsel %vm105_vm1, %v178_v12, 0.0 }
 0x119   :  { %115 = vadd.xlane.f32.xlu0 %v114_v13 }
 0x18c   :  { %v116_v14 = vpop.xlane.xlu0 %115 }
 0x18d   :  { %179 = vrcp.f32 %v116_v14  ;;  %vm145_vm3 = vcmp.eq.f32.partialorder %v116_v14, 0.0 }
 0x193   :  { %v180_v15 = vpop.eup %179 }
 0x194   :  { %v118_v16 = vmul.f32 %v180_v15, %v116_v14 }
 0x195   :  { %v141_v19 = vpop.f32.mrf.mxu1 }
 0x196   :  { %v119_v17 = vsub.f32 2.0, %v118_v16 }
 0x198   :  { %v120_v18 = vmul.f32 %v180_v15, %v119_v17 }
 0x19a   :  { %v144_v20 = vmul.f32 %v141_v19, %v120_v18 }
 0x19c   :  { %v148_v21 = vsel %vm145_vm3, 0.0, %v144_v20 }
 0x19d   :  { %149 = vst.msk [vmem:[#allocation10] sm:$0xff] %vm78_vm0, %v148_v21 }
 0x19e   :  { %160 = dma.vmem_to_hbm [thread:$0]  %s156_s3, 128, %s158_s9, [#allocation4]  }
 0x19f   :  { %307 = dma.done.wait [#allocation4], 128  }
 0x1a0   :  { %308 = vsyncadd [#allocation4], 4294967168 }
 0x1a1   :  { %165 = vsyncpa [#allocation3], 1 }
 0x1a2   :  { %166 = vsyncpa [#allocation6], 1 }
 0x1a3   :  { %167 = vsyncpa [#allocation9], 1 }
 0x1a4   :  { %168 = vsyncpa [#allocation4], 1 }

</bundles_post_ra>
